<compile_context>
chip_gen: v6e
topology: v6e:2x2x1
jax: 0.10.0
libtpu: 0.0.40
codegen_flags: <defaults>
</compile_context>

<pallas_src>
import functools

import jax
import jax.numpy as jnp
from jax.experimental import pallas as pl
from jax.experimental.pallas import tpu as pltpu

# Logical (unpadded) sizes of the autoencoder.
BATCH = 8
D_IN = 32   # input feature dim
H1 = 16     # encoder hidden
H2 = 8      # bottleneck (code) dim

DP = 128        # lane-dense padded hidden width (hidden layers only)
M_MIN = 8       # f32 minimum sublane tile
M_MAX = 512     # large-batch tile cap (amortizes per-grid-step overhead)


def _round_up(n, m):
    return ((n + m - 1) // m) * m


def _pick_m_tile(batch):
    """Tile to the real batch (small case), grow to 512 rows for large batches,
    and guarantee >=2 grid steps on v7x so both TensorCores get work."""
    padded = _round_up(batch, M_MIN)
    m_tile = min(padded, M_MAX)
    try:
        kind = jax.devices()[0].device_kind.lower()
    except Exception:
        kind = ""
    if "v7" in kind and padded >= 2 * M_MIN and padded // m_tile < 2:
        m_tile = _round_up(pl.cdiv(padded, 2), M_MIN)
    return m_tile


def _ae_kernel(x_ref, w_in_ref, w_hid_ref, w_out_ref, b_hid_ref, b_out_ref, out_ref):
    """Fused autoencoder forward for one (m_tile, D_IN) batch tile.

    x_ref    : (m_tile, D_IN)  f32
    w_in_ref : (D_IN, DP)      bf16   W1 (input rows unpadded)
    w_hid_ref: (2, DP, DP)     bf16   W2, W3
    w_out_ref: (DP, D_IN)      bf16   W4 (output lanes unpadded)
    b_hid_ref: (3, 1, DP)      f32    b1, b2, b3
    b_out_ref: (1, D_IN)       f32    b4
    out_ref  : (m_tile, D_IN)  f32
    """
    b_hid = b_hid_ref[...]                                  # hoisted: one load, 3 layers
    h = x_ref[...].astype(jnp.bfloat16)

    # Encoder layer 1: (m, 32) @ (32, 128)
    acc = jnp.dot(h, w_in_ref[...], preferred_element_type=jnp.float32)
    h = jnp.maximum(acc + b_hid[0], 0.0).astype(jnp.bfloat16)

    # Encoder layer 2 / decoder layer 1: (m, 128) @ (128, 128)
    for l in range(2):
        acc = jnp.dot(h, w_hid_ref[l], preferred_element_type=jnp.float32)
        h = jnp.maximum(acc + b_hid[l + 1], 0.0).astype(jnp.bfloat16)

    # Decoder output layer: (m, 128) @ (128, 32), sigmoid in f32.
    acc = jnp.dot(h, w_out_ref[...], preferred_element_type=jnp.float32)
    out_ref[...] = jax.nn.sigmoid(acc + b_out_ref[...])


@functools.partial(jax.jit, static_argnames=("m_tile",))
def net_forward(x, w_in, w_hid, w_out, b_hid, b_out, *, m_tile):
    """Batch-tiled, fully-fused autoencoder forward.

    x : (batch, D_IN) f32  ->  (batch, D_IN) f32 reconstruction.
    """
    batch, d_in = x.shape
    n_tiles = pl.cdiv(batch, m_tile)
    padded_batch = n_tiles * m_tile

    # Only pad batch rows (no lane padding of x); no-op when batch is a tile multiple.
    x_p = x if padded_batch == batch else jnp.pad(x, ((0, padded_batch - batch), (0, 0)))

    cost = pl.CostEstimate(
        flops=2 * padded_batch * (d_in * DP + 2 * DP * DP + DP * d_in),
        transcendentals=padded_batch * d_in,                 # sigmoid exp
        bytes_accessed=(x_p.size * 4
                        + (w_in.size + w_hid.size + w_out.size) * 2
                        + (b_hid.size + b_out.size) * 4
                        + padded_batch * d_in * 4),
    )

    out_p = pl.pallas_call(
        _ae_kernel,
        out_shape=jax.ShapeDtypeStruct((padded_batch, d_in), jnp.float32),
        grid=(n_tiles,),
        in_specs=[
            pl.BlockSpec((m_tile, d_in), lambda i: (i, 0)),       # batch tile of x
            pl.BlockSpec((d_in, DP), lambda i: (0, 0)),           # W1   (resident)
            pl.BlockSpec((2, DP, DP), lambda i: (0, 0, 0)),       # W2,W3 (resident)
            pl.BlockSpec((DP, d_in), lambda i: (0, 0)),           # W4   (resident)
            pl.BlockSpec((3, 1, DP), lambda i: (0, 0, 0)),        # b1..b3 (resident)
            pl.BlockSpec((1, d_in), lambda i: (0, 0)),            # b4   (resident)
        ],
        out_specs=pl.BlockSpec((m_tile, d_in), lambda i: (i, 0)),
        compiler_params=pltpu.CompilerParams(
            dimension_semantics=("parallel",),       # batch tiles split across TCs (v7x)
        ),
        cost_estimate=cost,
    )(x_p, w_in, w_hid, w_out, b_hid, b_out)

    return out_p if padded_batch == batch else out_p[:batch]


def init_params(key):
    """Deterministic parameter init (Kaiming-uniform-ish, like nn.Linear defaults).

    Weights stored as (in_features, out_features); biases as (1, out). f32, unpadded.
    """
    dims = [(D_IN, H1), (H1, H2), (H2, H1), (H1, D_IN)]
    params = []
    for (fan_in, fan_out) in dims:
        key, kw, kb = jax.random.split(key, 3)
        bound = 1.0 / jnp.sqrt(fan_in)
        w = jax.random.uniform(kw, (fan_in, fan_out), jnp.float32, -bound, bound)
        b = jax.random.uniform(kb, (1, fan_out), jnp.float32, -bound, bound)
        params.extend([w, b])
    return tuple(params)


def pack_params(params):
    """Pad hidden dims to 128 lanes; keep the input/output HBM-facing dims unpadded.

    Zero padding is exact: padded hidden lanes get bias 0 and ReLU keeps them at 0,
    and the corresponding zero weight rows contribute nothing downstream.
    """
    w1, b1, w2, b2, w3, b3, w4, b4 = params

    def pad_to(a, shape):
        return jnp.pad(a, [(0, t - s) for s, t in zip(a.shape, shape)])

    w_in = pad_to(w1, (D_IN, DP)).astype(jnp.bfloat16)                       # (32, 128)
    w_hid = jnp.stack([pad_to(w2, (DP, DP)), pad_to(w3, (DP, DP))]).astype(jnp.bfloat16)
    w_out = pad_to(w4, (DP, D_IN)).astype(jnp.bfloat16)                      # (128, 32)
    b_hid = jnp.stack([pad_to(b, (1, DP)) for b in (b1, b2, b3)]).astype(jnp.float32)
    b_out = b4.astype(jnp.float32)                                           # (1, 32)
    return w_in, w_hid, w_out, b_hid, b_out


def _reference_forward(x, params):
    """Pure-JAX f32 reference for a sanity check."""
    w1, b1, w2, b2, w3, b3, w4, b4 = params
    h = jnp.maximum(x @ w1 + b1, 0.0)
    h = jnp.maximum(h @ w2 + b2, 0.0)
    h = jnp.maximum(h @ w3 + b3, 0.0)
    return jax.nn.sigmoid(h @ w4 + b4)


if __name__ == "__main__":
    key = jax.random.PRNGKey(0)
    key, kx = jax.random.split(key)

    x = jax.random.normal(kx, (BATCH, D_IN), dtype=jnp.float32)
    params = init_params(key)
    w_in, w_hid, w_out, b_hid, b_out = pack_params(params)

    m_tile = _pick_m_tile(BATCH)
    out = net_forward(x, w_in, w_hid, w_out, b_hid, b_out, m_tile=m_tile)
    out = jax.block_until_ready(out)

    ref = _reference_forward(x, params)
    assert out.shape == (BATCH, D_IN)
    # Matmul inputs are bf16 (f32 accumulate), so loosen tolerance vs pure f32.
    assert jnp.allclose(out, ref, atol=2e-2, rtol=2e-2)

    print("KERNEL_OK")
</pallas_src>

<mosaic_0001>
module attributes {stable_mosaic.version = 11 : i64} {
  func.func @_ae_kernel(%arg0: i32, %arg1: memref<8x32xf32, #tpu.memory_space<vmem>>, %arg2: memref<32x128xbf16, #tpu.memory_space<vmem>>, %arg3: memref<2x128x128xbf16, #tpu.memory_space<vmem>>, %arg4: memref<128x32xbf16, #tpu.memory_space<vmem>>, %arg5: memref<3x1x128xf32, #tpu.memory_space<vmem>>, %arg6: memref<1x32xf32, #tpu.memory_space<vmem>>, %arg7: memref<8x32xf32, #tpu.memory_space<vmem>>) attributes {dimension_semantics = [#tpu.dimension_semantics<parallel>], iteration_bounds = array<i64: 1>, scalar_prefetch = 0 : i64, scratch_operands = 0 : i64, tpu.core_type = #tpu.core_type<tc>, window_params = [{transform_indices = @transform_0, window_bounds = array<i64: 8, 32>}, {pipeline_mode = #tpu.pipeline_mode<synchronous>, transform_indices = @transform_1, window_bounds = array<i64: 32, 128>}, {pipeline_mode = #tpu.pipeline_mode<synchronous>, transform_indices = @transform_2, window_bounds = array<i64: 2, 128, 128>}, {pipeline_mode = #tpu.pipeline_mode<synchronous>, transform_indices = @transform_3, window_bounds = array<i64: 128, 32>}, {pipeline_mode = #tpu.pipeline_mode<synchronous>, transform_indices = @transform_4, window_bounds = array<i64: 3, 1, 128>}, {pipeline_mode = #tpu.pipeline_mode<synchronous>, transform_indices = @transform_5, window_bounds = array<i64: 1, 32>}, {transform_indices = @transform_6, window_bounds = array<i64: 8, 32>}]} {
    %c0 = arith.constant 0 : index
    %c0_0 = arith.constant 0 : index
    %c0_1 = arith.constant 0 : index
    %0 = vector.load %arg5[%c0, %c0_0, %c0_1] : memref<3x1x128xf32, #tpu.memory_space<vmem>>, vector<3x1x128xf32>
    %c0_2 = arith.constant 0 : index
    %c0_3 = arith.constant 0 : index
    %1 = vector.load %arg1[%c0_2, %c0_3] : memref<8x32xf32, #tpu.memory_space<vmem>>, vector<8x32xf32>
    %2 = arith.truncf %1 : vector<8x32xf32> to vector<8x32xbf16>
    %c0_4 = arith.constant 0 : index
    %c0_5 = arith.constant 0 : index
    %3 = vector.load %arg2[%c0_4, %c0_5] : memref<32x128xbf16, #tpu.memory_space<vmem>>, vector<32x128xbf16>
    %cst = arith.constant dense<0.000000e+00> : vector<8x128xf32>
    %4 = tpu.matmul %2, %3, %cst {dimension_numbers = #tpu.dot_dimension_numbers<[1], [0], [0], [1], [0, 0, 1, 1], [], []>} : vector<8x32xbf16>, vector<32x128xbf16>, vector<8x128xf32> -> vector<8x128xf32>
    %5 = vector.extract_strided_slice %0 {offsets = [0, 0, 0], sizes = [1, 1, 128], strides = [1, 1, 1]} : vector<3x1x128xf32> to vector<1x1x128xf32>
    %6 = vector.shape_cast %5 : vector<1x1x128xf32> to vector<1x128xf32>
    %7 = vector.broadcast %6 : vector<1x128xf32> to vector<8x128xf32>
    %8 = arith.addf %4, %7 : vector<8x128xf32>
    %cst_6 = arith.constant 0.000000e+00 : f32
    %9 = vector.broadcast %cst_6 : f32 to vector<8x128xf32>
    %10 = arith.maximumf %8, %9 : vector<8x128xf32>
    %11 = arith.truncf %10 : vector<8x128xf32> to vector<8x128xbf16>
    %c0_7 = arith.constant 0 : index
    %c0_8 = arith.constant 0 : index
    %c0_9 = arith.constant 0 : index
    %12 = vector.load %arg3[%c0_7, %c0_8, %c0_9] : memref<2x128x128xbf16, #tpu.memory_space<vmem>>, vector<1x128x128xbf16>
    %13 = vector.shape_cast %12 : vector<1x128x128xbf16> to vector<128x128xbf16>
    %cst_10 = arith.constant dense<0.000000e+00> : vector<8x128xf32>
    %14 = tpu.matmul %11, %13, %cst_10 {dimension_numbers = #tpu.dot_dimension_numbers<[1], [0], [0], [1], [0, 0, 1, 1], [], []>} : vector<8x128xbf16>, vector<128x128xbf16>, vector<8x128xf32> -> vector<8x128xf32>
    %15 = vector.extract_strided_slice %0 {offsets = [1, 0, 0], sizes = [1, 1, 128], strides = [1, 1, 1]} : vector<3x1x128xf32> to vector<1x1x128xf32>
    %16 = vector.shape_cast %15 : vector<1x1x128xf32> to vector<1x128xf32>
    %17 = vector.broadcast %16 : vector<1x128xf32> to vector<8x128xf32>
    %18 = arith.addf %14, %17 : vector<8x128xf32>
    %cst_11 = arith.constant 0.000000e+00 : f32
    %19 = vector.broadcast %cst_11 : f32 to vector<8x128xf32>
    %20 = arith.maximumf %18, %19 : vector<8x128xf32>
    %21 = arith.truncf %20 : vector<8x128xf32> to vector<8x128xbf16>
    %c1 = arith.constant 1 : index
    %c0_12 = arith.constant 0 : index
    %c0_13 = arith.constant 0 : index
    %22 = vector.load %arg3[%c1, %c0_12, %c0_13] : memref<2x128x128xbf16, #tpu.memory_space<vmem>>, vector<1x128x128xbf16>
    %23 = vector.shape_cast %22 : vector<1x128x128xbf16> to vector<128x128xbf16>
    %cst_14 = arith.constant dense<0.000000e+00> : vector<8x128xf32>
    %24 = tpu.matmul %21, %23, %cst_14 {dimension_numbers = #tpu.dot_dimension_numbers<[1], [0], [0], [1], [0, 0, 1, 1], [], []>} : vector<8x128xbf16>, vector<128x128xbf16>, vector<8x128xf32> -> vector<8x128xf32>
    %25 = vector.extract_strided_slice %0 {offsets = [2, 0, 0], sizes = [1, 1, 128], strides = [1, 1, 1]} : vector<3x1x128xf32> to vector<1x1x128xf32>
    %26 = vector.shape_cast %25 : vector<1x1x128xf32> to vector<1x128xf32>
    %27 = vector.broadcast %26 : vector<1x128xf32> to vector<8x128xf32>
    %28 = arith.addf %24, %27 : vector<8x128xf32>
    %cst_15 = arith.constant 0.000000e+00 : f32
    %29 = vector.broadcast %cst_15 : f32 to vector<8x128xf32>
    %30 = arith.maximumf %28, %29 : vector<8x128xf32>
    %31 = arith.truncf %30 : vector<8x128xf32> to vector<8x128xbf16>
    %c0_16 = arith.constant 0 : index
    %c0_17 = arith.constant 0 : index
    %32 = vector.load %arg4[%c0_16, %c0_17] : memref<128x32xbf16, #tpu.memory_space<vmem>>, vector<128x32xbf16>
    %cst_18 = arith.constant dense<0.000000e+00> : vector<8x32xf32>
    %33 = tpu.matmul %31, %32, %cst_18 {dimension_numbers = #tpu.dot_dimension_numbers<[1], [0], [0], [1], [0, 0, 1, 1], [], []>} : vector<8x128xbf16>, vector<128x32xbf16>, vector<8x32xf32> -> vector<8x32xf32>
    %c0_19 = arith.constant 0 : index
    %c0_20 = arith.constant 0 : index
    %34 = vector.load %arg6[%c0_19, %c0_20] : memref<1x32xf32, #tpu.memory_space<vmem>>, vector<1x32xf32>
    %35 = vector.broadcast %34 : vector<1x32xf32> to vector<8x32xf32>
    %36 = arith.addf %33, %35 : vector<8x32xf32>
    %37 = arith.negf %36 : vector<8x32xf32>
    %38 = math.exp %37 : vector<8x32xf32>
    %cst_21 = arith.constant 1.000000e+00 : f32
    %39 = vector.broadcast %cst_21 : f32 to vector<8x32xf32>
    %40 = arith.addf %39, %38 : vector<8x32xf32>
    %41 = arith.divf %39, %40 : vector<8x32xf32>
    %c0_22 = arith.constant 0 : index
    %c0_23 = arith.constant 0 : index
    %42 = vector.load %arg7[%c0_22, %c0_23] : memref<8x32xf32, #tpu.memory_space<vmem>>, vector<8x32xf32>
    tpu.vector_store %arg7[%c0_22, %c0_23], %41 {strides = array<i32>} : memref<8x32xf32, #tpu.memory_space<vmem>>, vector<8x32xf32>,
    return
  }
  func.func @transform_0(%arg0: i32) -> (i32, i32) {
    %c0_i32 = arith.constant 0 : i32
    %c0_i32_0 = arith.constant 0 : i32
    return %arg0, %c0_i32 : i32, i32
  }
  func.func @transform_1(%arg0: i32) -> (i32, i32) {
    %c0_i32 = arith.constant 0 : i32
    %c0_i32_0 = arith.constant 0 : i32
    %c0_i32_1 = arith.constant 0 : i32
    return %c0_i32, %c0_i32_0 : i32, i32
  }
  func.func @transform_2(%arg0: i32) -> (i32, i32, i32) {
    %c0_i32 = arith.constant 0 : i32
    %c0_i32_0 = arith.constant 0 : i32
    %c0_i32_1 = arith.constant 0 : i32
    %c0_i32_2 = arith.constant 0 : i32
    return %c0_i32, %c0_i32_0, %c0_i32_1 : i32, i32, i32
  }
  func.func @transform_3(%arg0: i32) -> (i32, i32) {
    %c0_i32 = arith.constant 0 : i32
    %c0_i32_0 = arith.constant 0 : i32
    %c0_i32_1 = arith.constant 0 : i32
    return %c0_i32, %c0_i32_0 : i32, i32
  }
  func.func @transform_4(%arg0: i32) -> (i32, i32, i32) {
    %c0_i32 = arith.constant 0 : i32
    %c0_i32_0 = arith.constant 0 : i32
    %c0_i32_1 = arith.constant 0 : i32
    %c0_i32_2 = arith.constant 0 : i32
    return %c0_i32, %c0_i32_0, %c0_i32_1 : i32, i32, i32
  }
  func.func @transform_5(%arg0: i32) -> (i32, i32) {
    %c0_i32 = arith.constant 0 : i32
    %c0_i32_0 = arith.constant 0 : i32
    %c0_i32_1 = arith.constant 0 : i32
    return %c0_i32, %c0_i32_0 : i32, i32
  }
  func.func @transform_6(%arg0: i32) -> (i32, i32) {
    %c0_i32 = arith.constant 0 : i32
    %c0_i32_0 = arith.constant 0 : i32
    return %arg0, %c0_i32 : i32, i32
  }
}

</mosaic_0001>

<bundles_post_ra>
// kernel: net_forward.1
= control target key start
LH: loop header
LB: loop body
LE: loop exit
PB: predicated region body
PF: predicated region fallthrough
CT: control target
= control target key end

     0   :  { %11 = vsyncpa [#allocation3], 0  ;;  %s808_s0 = inlined_call_operand.vmem [shape: f32[8,32], index: 0, kind: input, shape index: {}]   ;;  %s809_s1 = inlined_call_operand.vmem [shape: bf16[32,128], index: 1, kind: input, shape index: {}]   ;;  %s810_s2 = inlined_call_operand.hbm [shape: bf16[2,128,128], index: 2, kind: input, shape index: {}]   ;;  %s811_s3 = inlined_call_operand.vmem [shape: bf16[128,32], index: 3, kind: input, shape index: {}]   ;;  %s812_s4 = inlined_call_operand.vmem [shape: f32[3,1,128], index: 4, kind: input, shape index: {}]   ;;  %s813_s5 = inlined_call_operand.vmem [shape: f32[1,32], index: 5, kind: input, shape index: {}]   ;;  %s814_s6 = inlined_call_operand.hbm [shape: f32[8,32], index: 6, kind: output, shape index: {}]  }
   0x1   :  { %12 = vsyncpa [#allocation4], 0  ;;  %s680_s21 = smov [#allocation2]  }
   0x2   :  { %s22_s22 = sshll.u32 %s680_s21, 4  ;;  %s23_s22 = int_to_ptr.vmem [resolvable:$true] %s22_s22 }
   0x3   :  { %s644_s23 = scalar_lea.vmem %s23_s22, 2048  ;;  %p649_p1 = scmp.lt.s32.totalorder %s23_s22, %s23_s22 }
   0x4   :  { %p645_p0 = scmp.ne.s32.totalorder %s23_s22, %s644_s23  ;;  %p650_p2 = scmp.lt.s32.totalorder %s644_s23, %s644_s23 }
   0x6   :  { %p651_p3 = por %p650_p2, %p649_p1 }
   0x8   :  { %p652_p4 = pnand %p651_p3, %p645_p0 }
   0xa   :  { %655 = shalt.err (!%p652_p4)
}
   0xb   :  { %s681_s24 = smov 64   ;;  %s682_s25 = smov 4  }
   0xc   :  { %28 = dma.hbm_to_vmem [thread:$0]  %s810_s2, 2048, %s23_s22, [#allocation3], %s681_s24, %s681_s24, %s682_s25  }
   0xd   :  { %676 = dma.done.wait [#allocation3], 2048  }
   0xe   :  { %677 = vsyncadd [#allocation3], 4294965248  ;;  %v683_v0 = vmov 0.0   ;;  %vm684_vm0 = vmmov 0   ;;  %v606_v1 = vld [vmem:[%s809_s1 + $0x8] sm:$0xff]   ;;  %v607_v2 = vld [vmem:[%s809_s1] sm:$0xff]  }
   0xf   :  { %532 = vmatprep.subr.bf16.mxu0 %v683_v0  ;;  %536 = vmatprep.mubr.msk.bf16.mxu0 %vm684_vm0, %v683_v0  ;;  %v42_v3 = vld [vmem:[%s808_s0] sm:$0xff]  ;;  %v608_v4 = vld [vmem:[#allocation2 + $0x38] sm:$0xff]   ;;  %v609_v6 = vld [vmem:[#allocation2 + $0x30] sm:$0xff]   ;;  %vm66_vm1 = vcmask 261120  }
  0x10   :  { %540 = vmatprep.subr.bf16.mxu1 %v683_v0  ;;  %556 = vmatprep.mubr.msk.bf16.mxu1 %vm684_vm0, %v683_v0  ;;  %v43_v5 = vpack.c.bf16 %v42_v3, %v42_v3  ;;  %v610_v7 = vld [vmem:[#allocation2 + $0x28] sm:$0xff]   ;;  %v611_v8 = vld [vmem:[#allocation2 + $0x20] sm:$0xff]   ;;  %v612_v9 = vld [vmem:[#allocation2 + $0x18] sm:$0xff]  }
  0x11   :  { %533 = vmatpush3.bf16.msra.mxu0 %v606_v1  ;;  %541 = vmatpush3.bf16.msra.mxu1 %v608_v4  ;;  %v613_v10 = vld [vmem:[#allocation2 + $0x10] sm:$0xff]   ;;  %v614_v11 = vld [vmem:[#allocation2 + $0x8] sm:$0xff]   ;;  %v615_v12 = vld [vmem:[#allocation2] sm:$0xff]  }
  0x12   :  { %534 = vmatprep.subr.bf16.mxu0 %v683_v0  ;;  %542 = vmatprep.subr.bf16.mxu1 %v683_v0  ;;  %v616_v13 = vld [vmem:[#allocation2 + $0x78] sm:$0xff]   ;;  %v617_v14 = vld [vmem:[#allocation2 + $0x70] sm:$0xff]   ;;  %v618_v15 = vld [vmem:[#allocation2 + $0x68] sm:$0xff]  }
  0x13   :  { %v619_v16 = vld [vmem:[#allocation2 + $0x60] sm:$0xff]   ;;  %v620_v17 = vld [vmem:[#allocation2 + $0x58] sm:$0xff]   ;;  %v621_v18 = vld [vmem:[#allocation2 + $0x50] sm:$0xff]  }
  0x14   :  { %v470_v19 = vld [vmem:[%s812_s4] ss:$0 sm:$0xff]  ;;  %v622_v27 = vld [vmem:[#allocation2 + $0x48] sm:$0xff]   ;;  %v624_v29 = vld [vmem:[%s811_s3 + $0x38] sm:$0xff]  }
  0x15   :  { %535 = vmatpush3.bf16.msra.mxu0 %v607_v2  ;;  %543 = vmatpush3.bf16.msra.mxu1 %v609_v6  ;;  %v623_v28 = vld [vmem:[#allocation2 + $0x40] sm:$0xff]   ;;  %v625_v30 = vld [vmem:[%s811_s3 + $0x30] sm:$0xff]   ;;  %v626_v31 = vld [vmem:[%s811_s3 + $0x28] sm:$0xff]  }
  0x16   :  { %560 = vmatprep.subr.bf16.mxu0 %v683_v0  ;;  %544 = vmatprep.subr.bf16.mxu1 %v683_v0  ;;  %v627_v32 = vld [vmem:[%s811_s3 + $0x20] sm:$0xff]   ;;  %v628_v33 = vld [vmem:[%s811_s3 + $0x18] sm:$0xff]   ;;  %v629_v34 = vld [vmem:[%s811_s3 + $0x10] sm:$0xff]  }
  0x17   :  { %v474_v35 = vld [vmem:[%s812_s4 + $0x1] ss:$0 sm:$0xff]  ;;  %v630_v43 = vld [vmem:[%s811_s3 + $0x8] sm:$0xff]   ;;  %v483_v45 = vld [vmem:[%s812_s4 + $0x2] ss:$0 sm:$0xff] }
  0x18   :  { %537 = vmatmul.mubr.msk.bf16.vlgmr.msra.gmra.mxu0 %vm66_vm1, %v43_v5  ;;  %v631_v44 = vld [vmem:[%s811_s3] sm:$0xff]   ;;  %s685_s3 = smov [#allocation5]  }
  0x19   :  { %576 = vmatprep.mubr.msk.bf16.mxu0 %vm684_vm0, %v683_v0  ;;  %545 = vmatpush3.bf16.msra.mxu1 %v610_v7  ;;  %v492_v53 = vld [vmem:[%s813_s5] ss:$0 sm:$0xff]  ;;  %s461_s4 = sshll.u32 %s685_s3, 4  ;;  %s462_s4 = int_to_ptr.vmem [resolvable:$true] %s461_s4 }
  0x1a   :  { %546 = vmatprep.subr.bf16.mxu1 %v683_v0  ;;  %561 = vmatpush3.bf16.msra.mxu0 %v616_v13  ;;  %s656_s2 = scalar_lea.vmem %s462_s4, 128  ;;  %p661_p6 = scmp.lt.s32.totalorder %s462_s4, %s462_s4 }
  0x1b   :  { %562 = vmatprep.subr.bf16.mxu0 %v683_v0  ;;  %p657_p5 = scmp.ne.s32.totalorder %s462_s4, %s656_s2  ;;  %p662_p7 = scmp.lt.s32.totalorder %s656_s2, %s656_s2 }
  0x1d   :  { %547 = vmatpush3.bf16.msra.mxu1 %v611_v8  ;;  %p663_p8 = por %p662_p7, %p661_p6 }
  0x1e   :  { %548 = vmatprep.subr.bf16.mxu1 %v683_v0  ;;  %563 = vmatpush3.bf16.msra.mxu0 %v617_v14 }
  0x1f   :  { %564 = vmatprep.subr.bf16.mxu0 %v683_v0  ;;  %p664_p9 = pnand %p663_p8, %p657_p5 }
  0x21   :  { %549 = vmatpush3.bf16.msra.mxu1 %v612_v9 }
  0x22   :  { %550 = vmatprep.subr.bf16.mxu1 %v683_v0  ;;  %565 = vmatpush3.bf16.msra.mxu0 %v618_v15 }
  0x23   :  { %566 = vmatprep.subr.bf16.mxu0 %v683_v0 }
  0x25   :  { %551 = vmatpush3.bf16.msra.mxu1 %v613_v10 }
  0x26   :  { %552 = vmatprep.subr.bf16.mxu1 %v683_v0  ;;  %567 = vmatpush3.bf16.msra.mxu0 %v619_v16 }
  0x27   :  { %568 = vmatprep.subr.bf16.mxu0 %v683_v0 }
  0x29   :  { %553 = vmatpush3.bf16.msra.mxu1 %v614_v11 }
  0x2a   :  { %554 = vmatprep.subr.bf16.mxu1 %v683_v0  ;;  %569 = vmatpush3.bf16.msra.mxu0 %v620_v17 }
  0x2b   :  { %570 = vmatprep.subr.bf16.mxu0 %v683_v0 }
  0x2d   :  { %555 = vmatpush3.bf16.msra.mxu1 %v615_v12 }
  0x2e   :  { %580 = vmatprep.subr.bf16.mxu1 %v683_v0  ;;  %571 = vmatpush3.bf16.msra.mxu0 %v621_v18 }
  0x2f   :  { %572 = vmatprep.subr.bf16.mxu0 %v683_v0 }
  0x32   :  { %573 = vmatpush3.bf16.msra.mxu0 %v622_v27 }
  0x33   :  { %574 = vmatprep.subr.bf16.mxu0 %v683_v0 }
  0x36   :  { %575 = vmatpush3.bf16.msra.mxu0 %v623_v28 }
  0xd8   :  { %v104_v20 = vpop.f32.mrf.mxu0 }
  0xd9   :  { %v105_v21 = vadd.f32 %v470_v19, %v104_v20 }
  0xda   :  { %v538_v22 = vpop.f32.mrf.mxu0 }
  0xdb   :  { %v110_v23 = vmax.f32 %v105_v21, 0.0 }
  0xdc   :  { %v107_v24 = vpop.f32.mrf.mxu0 }
  0xdd   :  { %v111_v25 = vpack.c.bf16 %v110_v23, %v110_v23 }
  0xde   :  { %v539_v26 = vpop.f32.mrf.mxu0 }
  0xdf   :  { %557 = vmatmul.mubr.bf16.vlgmr.msra.gmra.mxu1 %v111_v25 }
  0xe0   :  { %596 = vmatprep.mubr.msk.bf16.mxu1 %vm684_vm0, %v683_v0  ;;  %581 = vmatpush3.bf16.msra.mxu1 %v624_v29 }
  0xe1   :  { %582 = vmatprep.subr.bf16.mxu1 %v683_v0 }
  0xe4   :  { %583 = vmatpush3.bf16.msra.mxu1 %v625_v30 }
  0xe5   :  { %584 = vmatprep.subr.bf16.mxu1 %v683_v0 }
  0xe8   :  { %585 = vmatpush3.bf16.msra.mxu1 %v626_v31 }
  0xe9   :  { %586 = vmatprep.subr.bf16.mxu1 %v683_v0 }
  0xec   :  { %587 = vmatpush3.bf16.msra.mxu1 %v627_v32 }
  0xed   :  { %588 = vmatprep.subr.bf16.mxu1 %v683_v0 }
  0xf0   :  { %589 = vmatpush3.bf16.msra.mxu1 %v628_v33 }
  0xf1   :  { %590 = vmatprep.subr.bf16.mxu1 %v683_v0 }
  0xf4   :  { %591 = vmatpush3.bf16.msra.mxu1 %v629_v34 }
  0xf5   :  { %592 = vmatprep.subr.bf16.mxu1 %v683_v0 }
  0xf8   :  { %593 = vmatpush3.bf16.msra.mxu1 %v630_v43 }
  0xf9   :  { %594 = vmatprep.subr.bf16.mxu1 %v683_v0 }
  0xfc   :  { %595 = vmatpush3.bf16.msra.mxu1 %v631_v44 }
 0x19f   :  { %v216_v36 = vpop.f32.mrf.mxu1 }
 0x1a0   :  { %v217_v37 = vadd.f32 %v474_v35, %v216_v36 }
 0x1a1   :  { %v558_v38 = vpop.f32.mrf.mxu1 }
 0x1a2   :  { %v222_v39 = vmax.f32 %v217_v37, 0.0 }
 0x1a3   :  { %v219_v40 = vpop.f32.mrf.mxu1 }
 0x1a4   :  { %v223_v41 = vpack.c.bf16 %v222_v39, %v222_v39 }
 0x1a5   :  { %v559_v42 = vpop.f32.mrf.mxu1 }
 0x1a6   :  { %577 = vmatmul.mubr.bf16.vlgmr.msra.gmra.mxu0 %v223_v41 }
 0x266   :  { %v329_v46 = vpop.f32.mrf.mxu0 }
 0x267   :  { %v330_v47 = vadd.f32 %v483_v45, %v329_v46 }
 0x268   :  { %v578_v48 = vpop.f32.mrf.mxu0 }
 0x269   :  { %v335_v49 = vmax.f32 %v330_v47, 0.0 }
 0x26a   :  { %v332_v50 = vpop.f32.mrf.mxu0 }
 0x26b   :  { %v336_v51 = vpack.c.bf16 %v335_v49, %v335_v49 }
 0x26c   :  { %v579_v52 = vpop.f32.mrf.mxu0 }
 0x26d   :  { %597 = vmatmul.mubr.bf16.vlgmr.msra.gmra.mxu1 %v336_v51 }
 0x32d   :  { %v442_v54 = vpop.f32.mrf.mxu1 }
 0x32e   :  { %v443_v55 = vadd.f32 %v492_v53, %v442_v54 }
 0x32f   :  { %v598_v56 = vpop.f32.mrf.mxu1 }
 0x330   :  { %v501_v57 = vmul.f32 -1.442695, %v443_v55 }
 0x331   :  { %v445_v58 = vpop.f32.mrf.mxu1 }
 0x332   :  { %632 = vpow2.f32 %v501_v57 }
 0x333   :  { %v599_v59 = vpop.f32.mrf.mxu1 }
 0x33f   :  { %v633_v60 = vpop.eup %632 }
 0x340   :  { %v451_v61 = vadd.f32 1.0, %v633_v60 }
 0x342   :  { %634 = vrcp.f32 %v451_v61 }
 0x34f   :  { %v635_v62 = vpop.eup %634 }
 0x350   :  { %454 = vst.msk [vmem:[#allocation5] sm:$0xff] %vm66_vm1, %v635_v62 }
 0x351   :  { %667 = shalt.err (!%p664_p9)
}
 0x352   :  { %464 = dma.vmem_to_hbm [thread:$0]  %s462_s4, 128, %s814_s6, [#allocation4]  }
 0x353   :  { %678 = dma.done.wait [#allocation4], 128  }
 0x354   :  { %679 = vsyncadd [#allocation4], 4294967168 }
 0x355   :  { %468 = vsyncpa [#allocation3], 1 }
 0x356   :  { %469 = vsyncpa [#allocation4], 1 }

</bundles_post_ra>
